<compile_context>
chip_gen: v6e
topology: v6e:2x2x1
jax: 0.10.0
libtpu: 0.0.40
codegen_flags: <defaults>
</compile_context>

<pallas_src>
import functools

import jax
import jax.numpy as jnp
import numpy as np
from jax import lax
from jax.experimental import pallas as pl
from jax.experimental.pallas import tpu as pltpu

MEAN = 0.1307
SIGMA = 0.3081
OUT_LANES = 128          # lane-padded width of the packed (upper, lower) output
N_RELU = 2               # number of ReLU layers in the fixed network below


def _round_up(x, m):
    return (x + m - 1) // m * m


# ----------------------------- fused Pallas kernel -----------------------------

def _zonotope_fused_kernel(n0, mean, inv_sigma,
                           x_ref, eps_ref, g_ref, absg_ref, cb_ref,
                           w1t_ref, b1_ref, w2t_ref, b2_ref, out_ref):
    """Whole Zonotope forward pass for ONE image (one grid step).

    Layout: error terms on sublanes (rows), neurons on lanes.  The input-noise
    diagonal is factored out: the carried matrix M is the *unit* generator
    (initially the conv-as-matrix G, rows >= n0 zero) and the per-error-term
    magnitudes live in the single row d_full.
    """
    f32 = jnp.float32
    R = g_ref.shape[0]                               # padded error-term rows

    # ---- input box -> zonotope preamble + Normalize (module.forward) ----------
    x = x_ref[...]                                   # (1, R), lanes >= n0 are pad
    eps_box = eps_ref[...]                           # (1, 1)
    up = jnp.minimum(x + eps_box, 1.0)               # == upper - relu(upper - 1)
    lo = jnp.maximum(x - eps_box, 0.0)               # == relu(lower)
    v = up + lo                                      # module's "values" (center)
    d = v - lo                                       # module's diag generator magnitude
    v = (v - mean) * inv_sigma                       # Normalize layer
    d = d * inv_sigma

    # d_full: |input magnitudes| on lanes < n0, 1.0 on the two ReLU-error lanes,
    # 0 on sublane padding.  (Pad lanes of v are harmless: G rows >= n0 are 0.)
    lane = lax.broadcasted_iota(jnp.int32, (1, R), 1)
    d_full = jnp.where(lane < n0, jnp.abs(d),
                       jnp.where(lane < n0 + N_RELU, 1.0, 0.0))

    # ---- Conv2d: center = v @ G + b ; unit generator matrix = G ---------------
    G = g_ref[...]                                   # (R, Mc)
    center = jnp.dot(v, G, preferred_element_type=f32) + cb_ref[...]   # (1, Mc)
    M = G

    def relu(center, M, abs_M, fresh_row):
        # DeepZ ReLU with slope = u/(u-l) (first-forward / `slope <= base` branch).
        s = jnp.dot(d_full, abs_M, preferred_element_type=f32)          # (1, w)
        u = center + s
        l = center - s
        denom = u - l
        # denom == 0 only for dead/stable lanes; guard value never exposed.
        slope = u / jnp.where(denom == 0.0, 1.0, denom)
        term = (1.0 - slope) * u * 0.5
        dead = u <= 0.0
        stable = l >= 0.0
        crossing = jnp.logical_and(u > 0.0, l < 0.0)
        new_center = jnp.where(dead, 0.0,
                               jnp.where(stable, center, slope * center + term))
        scale = jnp.where(dead, 0.0, jnp.where(stable, 1.0, slope))     # (1, w)
        fresh = jnp.where(crossing, term, 0.0)                          # (1, w)
        rows = lax.broadcasted_iota(jnp.int32, M.shape, 0)
        new_M = M * scale + jnp.where(rows == fresh_row, fresh, 0.0)
        return new_center, new_M

    # ---- ReLU #1 (|G| precomputed on host) ----
    center, M = relu(center, M, absg_ref[...], n0)

    # ---- Flatten: no-op in (rows = error terms, lanes = neurons) layout ----

    # ---- Linear 1 ----
    w1t = w1t_ref[...]
    center = jnp.dot(center, w1t, preferred_element_type=f32) + b1_ref[...]
    M = jnp.dot(M, w1t, preferred_element_type=f32)

    # ---- ReLU #2 ----
    center, M = relu(center, M, jnp.abs(M), n0 + 1)

    # ---- Linear 2 (lane-padded to OUT_LANES on host) ----
    w2t = w2t_ref[...]
    center = jnp.dot(center, w2t, preferred_element_type=f32) + b2_ref[...]
    M = jnp.dot(M, w2t, preferred_element_type=f32)

    # ---- final bounds, packed into one lane-dense (2, OUT_LANES) store --------
    s = jnp.dot(d_full, jnp.abs(M), preferred_element_type=f32)
    upper = center + s
    lower = center - s
    rows2 = lax.broadcasted_iota(jnp.int32, out_ref.shape, 0)
    out_ref[...] = jnp.where(rows2 == 0, upper, lower)


# ------------------------------- host-side prep --------------------------------

def build_conv_matrix(conv_w, h, w, stride):
    """Dense (Ci*H*W, Co*Ho*Wo) matrix of the valid-padding Conv2d as a linear
    map on the flattened NCHW input.  Pure numpy; runs once at prep time."""
    conv_w = np.asarray(conv_w, np.float32)
    co, ci, kh, kw = conv_w.shape
    ho = (h - kh) // stride + 1
    wo = (w - kw) // stride + 1
    G = np.zeros((ci * h * w, co * ho * wo), np.float32)
    for c in range(ci):
        for ih in range(h):
            for iw in range(w):
                t = (c * h + ih) * w + iw
                for oh in range(ho):
                    dkh = ih - oh * stride
                    if not (0 <= dkh < kh):
                        continue
                    for ow in range(wo):
                        dkw = iw - ow * stride
                        if not (0 <= dkw < kw):
                            continue
                        for o in range(co):
                            m = (o * ho + oh) * wo + ow
                            G[t, m] = conv_w[o, c, dkh, dkw]
    return G


def prepare_zonotope_params(conv_w, conv_b, conv_stride, w1, b1, w2, b2, h, w, ci=1):
    """One-time constant prep (hoisted out of the per-call path)."""
    conv_w = np.asarray(conv_w, np.float32)
    conv_b = np.asarray(conv_b, np.float32)
    w1 = np.asarray(w1, np.float32)
    b1 = np.asarray(b1, np.float32)
    w2 = np.asarray(w2, np.float32)
    b2 = np.asarray(b2, np.float32)

    co, _, kh, kw = conv_w.shape
    ho = (h - kh) // conv_stride + 1
    wo = (w - kw) // conv_stride + 1
    n0 = ci * h * w
    R = _round_up(n0 + N_RELU, 8)
    n_out = w2.shape[0]
    assert n_out <= OUT_LANES

    G = build_conv_matrix(conv_w, h, w, conv_stride)                 # (n0, Mc)
    G_pad = np.zeros((R, G.shape[1]), np.float32)
    G_pad[:n0] = G
    cb_row = np.repeat(conv_b, ho * wo)[None, :].astype(np.float32)  # (1, Mc)
    w2t_pad = np.zeros((w2.shape[1], OUT_LANES), np.float32)
    w2t_pad[:, :n_out] = w2.T
    b2_pad = np.zeros((1, OUT_LANES), np.float32)
    b2_pad[0, :n_out] = b2

    return dict(
        n0=n0, R=R, n_out=n_out,
        G=jnp.asarray(G_pad),
        absG=jnp.asarray(np.abs(G_pad)),
        cb=jnp.asarray(cb_row),
        w1t=jnp.asarray(np.ascontiguousarray(w1.T)),
        b1=jnp.asarray(b1[None, :]),
        w2t=jnp.asarray(w2t_pad),
        b2=jnp.asarray(b2_pad),
    )


# ------------------------------- forward (jitted) ------------------------------

@functools.partial(jax.jit, static_argnums=(0,))
def _zonotope_batched(n_out, x, eps_val, G, absG, cb, w1t, b1, w2t, b2):
    B = x.shape[0]
    n0 = int(np.prod(x.shape[1:]))
    R, Mc = G.shape
    H1 = w1t.shape[1]

    x_row = jnp.reshape(x.astype(jnp.float32), (B, 1, n0))
    x_pad = jnp.pad(x_row, ((0, 0), (0, 0), (0, R - n0)))            # (B, 1, R)
    eps_arr = jnp.full((1, 1), eps_val, jnp.float32)

    kern = functools.partial(_zonotope_fused_kernel, n0, MEAN, 1.0 / SIGMA)

    def const(shape):
        return pl.BlockSpec(shape, lambda b: (0,) * len(shape))      # grid-invariant

    out = pl.pallas_call(
        kern,
        grid=(B,),
        out_shape=jax.ShapeDtypeStruct((B, 2, OUT_LANES), jnp.float32),
        in_specs=[
            pl.BlockSpec((None, 1, R), lambda b: (b, 0, 0)),         # x (per image)
            const((1, 1)),                                           # eps
            const((R, Mc)),                                          # G (padded)
            const((R, Mc)),                                          # |G|
            const((1, Mc)),                                          # conv bias row
            const((Mc, H1)),                                         # w1^T
            const((1, H1)),                                          # b1 row
            const((H1, OUT_LANES)),                                  # w2^T (lane-padded)
            const((1, OUT_LANES)),                                   # b2 row (lane-padded)
        ],
        out_specs=pl.BlockSpec((None, 2, OUT_LANES), lambda b: (b, 0, 0)),
        compiler_params=pltpu.CompilerParams(
            dimension_semantics=("parallel",)),
    )(x_pad, eps_arr, G, absG, cb, w1t, b1, w2t, b2)

    return out[:, 0, :n_out], out[:, 1, :n_out]


def zonotope_forward(params, x, eps_val):
    """x: (B, Ci, H, W) batch of images -> (upper, lower) each (B, n_out)."""
    return _zonotope_batched(params["n_out"], x, eps_val,
                             params["G"], params["absG"], params["cb"],
                             params["w1t"], params["b1"],
                             params["w2t"], params["b2"])


# --------------------------- pure-JAX reference ----------------------------

def zonotope_forward_ref(x, eps_val, conv_w, conv_b, conv_stride, w1, b1, w2, b2):
    up = x + eps_val
    lo = x - eps_val
    up = up - jnp.maximum(up - 1.0, 0.0)
    lo = jnp.maximum(lo, 0.0)
    values = up + lo
    d = values - lo
    n0 = x.size
    eps = jnp.diag(d.reshape(-1)).reshape(x.shape + (n0,))
    values = (values - MEAN) / SIGMA
    eps = eps / SIGMA
    dn = ('NCHW', 'OIHW', 'NCHW')
    values = jax.lax.conv_general_dilated(values, conv_w, (conv_stride,) * 2, 'VALID',
                                          dimension_numbers=dn) + conv_b.reshape(1, -1, 1, 1)
    eb = jnp.moveaxis(eps[0], -1, 0)
    eb = jax.lax.conv_general_dilated(eb, conv_w, (conv_stride,) * 2, 'VALID',
                                      dimension_numbers=dn)
    eps = jnp.moveaxis(eb, 0, -1)[None]

    def relu_ref(values, eps):
        m = values.size
        ne = eps.shape[-1]
        v = values.reshape(m)
        e = eps.reshape(m, ne)
        s = jnp.sum(jnp.abs(e), axis=-1)
        u = v + s
        l = v - s
        slope = u / jnp.where(u - l == 0.0, 1.0, u - l)
        term = (1.0 - slope) * u * 0.5
        dead = u <= 0.0
        stable = l >= 0.0
        crossing = (u > 0.0) & (l < 0.0)
        nv = jnp.where(dead, 0.0, jnp.where(stable, v, slope * v + term))
        scale = jnp.where(dead, 0.0, jnp.where(stable, 1.0, slope))
        new_e = jnp.concatenate([e * scale[:, None],
                                 jnp.where(crossing, term, 0.0)[:, None]], axis=-1)
        return nv.reshape(values.shape), new_e.reshape(eps.shape[:-1] + (ne + 1,))

    values, eps = relu_ref(values, eps)
    v = values.reshape(-1)
    e = eps.reshape(v.size, eps.shape[-1])
    v = w1 @ v + b1
    e = w1 @ e
    v, e = relu_ref(v, e)
    v = w2 @ v + b2
    e = w2 @ e
    s = jnp.sum(jnp.abs(e), axis=-1)
    return v + s, v - s


# --------------------------------- main ------------------------------------

if __name__ == "__main__":
    key = jax.random.PRNGKey(0)
    ks = jax.random.split(key, 7)

    # Small deterministic problem: batch of 4 single-channel 8x8 images, eps=0.1.
    B = 4
    x = jax.random.uniform(ks[0], (B, 1, 8, 8), jnp.float32)
    eps_val = 0.1
    conv_w = 0.3 * jax.random.normal(ks[1], (4, 1, 4, 4), jnp.float32)   # Conv2d(1,4,k=4,s=2)
    conv_b = 0.1 * jax.random.normal(ks[2], (4,), jnp.float32)
    w1 = 0.2 * jax.random.normal(ks[3], (16, 36), jnp.float32)           # Linear(36,16)
    b1 = 0.1 * jax.random.normal(ks[4], (16,), jnp.float32)
    w2 = 0.2 * jax.random.normal(ks[5], (10, 16), jnp.float32)           # Linear(16,10)
    b2 = 0.1 * jax.random.normal(ks[6], (10,), jnp.float32)

    # One-time constant prep (hoisted off the per-call path).
    params = prepare_zonotope_params(conv_w, conv_b, 2, w1, b1, w2, b2, h=8, w=8, ci=1)

    upper, lower = zonotope_forward(params, x, eps_val)
    jax.block_until_ready((upper, lower))

    # Check every batch element against the pure-JAX reference.
    for i in range(B):
        ref_u, ref_l = zonotope_forward_ref(x[i:i + 1], eps_val, conv_w, conv_b, 2,
                                            w1, b1, w2, b2)
        assert np.allclose(np.asarray(upper[i]), np.asarray(ref_u), rtol=1e-3, atol=1e-3)
        assert np.allclose(np.asarray(lower[i]), np.asarray(ref_l), rtol=1e-3, atol=1e-3)
    print("KERNEL_OK")
</pallas_src>

<mosaic_0001>
module attributes {stable_mosaic.version = 11 : i64} {
  func.func @_zonotope_fused_kernel(%arg0: i32, %arg1: memref<1x1x72xf32, #tpu.memory_space<vmem>>, %arg2: memref<1x1xf32, #tpu.memory_space<vmem>>, %arg3: memref<72x36xf32, #tpu.memory_space<vmem>>, %arg4: memref<72x36xf32, #tpu.memory_space<vmem>>, %arg5: memref<1x36xf32, #tpu.memory_space<vmem>>, %arg6: memref<36x16xf32, #tpu.memory_space<vmem>>, %arg7: memref<1x16xf32, #tpu.memory_space<vmem>>, %arg8: memref<16x128xf32, #tpu.memory_space<vmem>>, %arg9: memref<1x128xf32, #tpu.memory_space<vmem>>, %arg10: memref<1x2x128xf32, #tpu.memory_space<vmem>>) attributes {dimension_semantics = [#tpu.dimension_semantics<parallel>], iteration_bounds = array<i64: 4>, scalar_prefetch = 0 : i64, scratch_operands = 0 : i64, tpu.core_type = #tpu.core_type<tc>, window_params = [{transform_indices = @transform_0, window_bounds = array<i64: 1, 1, 72>}, {pipeline_mode = #tpu.pipeline_mode<synchronous>, transform_indices = @transform_1, window_bounds = array<i64: 1, 1>}, {pipeline_mode = #tpu.pipeline_mode<synchronous>, transform_indices = @transform_2, window_bounds = array<i64: 72, 36>}, {pipeline_mode = #tpu.pipeline_mode<synchronous>, transform_indices = @transform_3, window_bounds = array<i64: 72, 36>}, {pipeline_mode = #tpu.pipeline_mode<synchronous>, transform_indices = @transform_4, window_bounds = array<i64: 1, 36>}, {pipeline_mode = #tpu.pipeline_mode<synchronous>, transform_indices = @transform_5, window_bounds = array<i64: 36, 16>}, {pipeline_mode = #tpu.pipeline_mode<synchronous>, transform_indices = @transform_6, window_bounds = array<i64: 1, 16>}, {pipeline_mode = #tpu.pipeline_mode<synchronous>, transform_indices = @transform_7, window_bounds = array<i64: 16, 128>}, {pipeline_mode = #tpu.pipeline_mode<synchronous>, transform_indices = @transform_8, window_bounds = array<i64: 1, 128>}, {transform_indices = @transform_9, window_bounds = array<i64: 1, 2, 128>}]} {
    %c0 = arith.constant 0 : index
    %c0_0 = arith.constant 0 : index
    %c0_1 = arith.constant 0 : index
    %0 = vector.load %arg1[%c0, %c0_0, %c0_1] : memref<1x1x72xf32, #tpu.memory_space<vmem>>, vector<1x1x72xf32>
    %1 = vector.shape_cast %0 : vector<1x1x72xf32> to vector<1x72xf32>
    %c0_2 = arith.constant 0 : index
    %c0_3 = arith.constant 0 : index
    %2 = vector.load %arg2[%c0_2, %c0_3] : memref<1x1xf32, #tpu.memory_space<vmem>>, vector<1x1xf32>
    %3 = vector.broadcast %2 : vector<1x1xf32> to vector<1x72xf32>
    %4 = arith.addf %1, %3 : vector<1x72xf32>
    %cst = arith.constant 1.000000e+00 : f32
    %5 = vector.broadcast %cst : f32 to vector<1x72xf32>
    %6 = arith.minimumf %4, %5 : vector<1x72xf32>
    %7 = vector.broadcast %2 : vector<1x1xf32> to vector<1x72xf32>
    %8 = arith.subf %1, %7 : vector<1x72xf32>
    %cst_4 = arith.constant 0.000000e+00 : f32
    %9 = vector.broadcast %cst_4 : f32 to vector<1x72xf32>
    %10 = arith.maximumf %8, %9 : vector<1x72xf32>
    %11 = arith.addf %6, %10 : vector<1x72xf32>
    %12 = arith.subf %11, %10 : vector<1x72xf32>
    %cst_5 = arith.constant 1.307000e-01 : f32
    %13 = vector.broadcast %cst_5 : f32 to vector<1x72xf32>
    %14 = arith.subf %11, %13 : vector<1x72xf32>
    %cst_6 = arith.constant 3.24569941 : f32
    %15 = vector.broadcast %cst_6 : f32 to vector<1x72xf32>
    %16 = arith.mulf %14, %15 : vector<1x72xf32>
    %cst_7 = arith.constant 3.24569941 : f32
    %17 = vector.broadcast %cst_7 : f32 to vector<1x72xf32>
    %18 = arith.mulf %12, %17 : vector<1x72xf32>
    %19 = tpu.iota {dimensions = array<i32: 1>} : vector<1x72xi32>
    %c64_i32 = arith.constant 64 : i32
    %20 = vector.broadcast %c64_i32 : i32 to vector<1x72xi32>
    %21 = arith.cmpi slt, %19, %20 : vector<1x72xi32>
    %22 = math.absf %18 : vector<1x72xf32>
    %c66_i32 = arith.constant 66 : i32
    %23 = vector.broadcast %c66_i32 : i32 to vector<1x72xi32>
    %24 = arith.cmpi slt, %19, %23 : vector<1x72xi32>
    %cst_8 = arith.constant 1.000000e+00 : f32
    %cst_9 = arith.constant 0.000000e+00 : f32
    %25 = vector.broadcast %cst_8 : f32 to vector<1x72xf32>
    %26 = vector.broadcast %cst_9 : f32 to vector<1x72xf32>
    %27 = arith.select %24, %25, %26 : vector<1x72xi1>, vector<1x72xf32>
    %28 = arith.select %21, %22, %27 : vector<1x72xi1>, vector<1x72xf32>
    %c0_10 = arith.constant 0 : index
    %c0_11 = arith.constant 0 : index
    %29 = vector.load %arg3[%c0_10, %c0_11] : memref<72x36xf32, #tpu.memory_space<vmem>>, vector<72x36xf32>
    %cst_12 = arith.constant dense<0.000000e+00> : vector<1x36xf32>
    %30 = tpu.matmul %16, %29, %cst_12 {dimension_numbers = #tpu.dot_dimension_numbers<[1], [0], [0], [1], [0, 0, 1, 1], [], []>} : vector<1x72xf32>, vector<72x36xf32>, vector<1x36xf32> -> vector<1x36xf32>
    %c0_13 = arith.constant 0 : index
    %c0_14 = arith.constant 0 : index
    %31 = vector.load %arg5[%c0_13, %c0_14] : memref<1x36xf32, #tpu.memory_space<vmem>>, vector<1x36xf32>
    %32 = arith.addf %30, %31 : vector<1x36xf32>
    %c0_15 = arith.constant 0 : index
    %c0_16 = arith.constant 0 : index
    %33 = vector.load %arg4[%c0_15, %c0_16] : memref<72x36xf32, #tpu.memory_space<vmem>>, vector<72x36xf32>
    %cst_17 = arith.constant dense<0.000000e+00> : vector<1x36xf32>
    %34 = tpu.matmul %28, %33, %cst_17 {dimension_numbers = #tpu.dot_dimension_numbers<[1], [0], [0], [1], [0, 0, 1, 1], [], []>} : vector<1x72xf32>, vector<72x36xf32>, vector<1x36xf32> -> vector<1x36xf32>
    %35 = arith.addf %32, %34 : vector<1x36xf32>
    %36 = arith.subf %32, %34 : vector<1x36xf32>
    %37 = arith.subf %35, %36 : vector<1x36xf32>
    %cst_18 = arith.constant 0.000000e+00 : f32
    %38 = vector.broadcast %cst_18 : f32 to vector<1x36xf32>
    %39 = arith.cmpf oeq, %37, %38 : vector<1x36xf32>
    %cst_19 = arith.constant 1.000000e+00 : f32
    %40 = vector.broadcast %cst_19 : f32 to vector<1x36xf32>
    %41 = arith.select %39, %40, %37 : vector<1x36xi1>, vector<1x36xf32>
    %42 = arith.divf %35, %41 : vector<1x36xf32>
    %cst_20 = arith.constant 1.000000e+00 : f32
    %43 = vector.broadcast %cst_20 : f32 to vector<1x36xf32>
    %44 = arith.subf %43, %42 : vector<1x36xf32>
    %45 = arith.mulf %44, %35 : vector<1x36xf32>
    %cst_21 = arith.constant 5.000000e-01 : f32
    %46 = vector.broadcast %cst_21 : f32 to vector<1x36xf32>
    %47 = arith.mulf %45, %46 : vector<1x36xf32>
    %cst_22 = arith.constant 0.000000e+00 : f32
    %48 = vector.broadcast %cst_22 : f32 to vector<1x36xf32>
    %49 = arith.cmpf ole, %35, %48 : vector<1x36xf32>
    %cst_23 = arith.constant 0.000000e+00 : f32
    %50 = vector.broadcast %cst_23 : f32 to vector<1x36xf32>
    %51 = arith.cmpf oge, %36, %50 : vector<1x36xf32>
    %cst_24 = arith.constant 0.000000e+00 : f32
    %52 = vector.broadcast %cst_24 : f32 to vector<1x36xf32>
    %53 = arith.cmpf ogt, %35, %52 : vector<1x36xf32>
    %cst_25 = arith.constant 0.000000e+00 : f32
    %54 = vector.broadcast %cst_25 : f32 to vector<1x36xf32>
    %55 = arith.cmpf olt, %36, %54 : vector<1x36xf32>
    %56 = arith.andi %53, %55 : vector<1x36xi1>
    %57 = arith.mulf %42, %32 : vector<1x36xf32>
    %58 = arith.addf %57, %47 : vector<1x36xf32>
    %59 = arith.select %51, %32, %58 : vector<1x36xi1>, vector<1x36xf32>
    %cst_26 = arith.constant 0.000000e+00 : f32
    %60 = vector.broadcast %cst_26 : f32 to vector<1x36xf32>
    %61 = arith.select %49, %60, %59 : vector<1x36xi1>, vector<1x36xf32>
    %cst_27 = arith.constant 1.000000e+00 : f32
    %62 = vector.broadcast %cst_27 : f32 to vector<1x36xf32>
    %63 = arith.select %51, %62, %42 : vector<1x36xi1>, vector<1x36xf32>
    %cst_28 = arith.constant 0.000000e+00 : f32
    %64 = vector.broadcast %cst_28 : f32 to vector<1x36xf32>
    %65 = arith.select %49, %64, %63 : vector<1x36xi1>, vector<1x36xf32>
    %cst_29 = arith.constant 0.000000e+00 : f32
    %66 = vector.broadcast %cst_29 : f32 to vector<1x36xf32>
    %67 = arith.select %56, %47, %66 : vector<1x36xi1>, vector<1x36xf32>
    %68 = tpu.iota {dimensions = array<i32: 0>} : vector<72x36xi32>
    %69 = vector.broadcast %65 : vector<1x36xf32> to vector<72x36xf32>
    %70 = arith.mulf %29, %69 : vector<72x36xf32>
    %c64_i32_30 = arith.constant 64 : i32
    %71 = vector.broadcast %c64_i32_30 : i32 to vector<72x36xi32>
    %72 = arith.cmpi eq, %68, %71 : vector<72x36xi32>
    %cst_31 = arith.constant 0.000000e+00 : f32
    %73 = vector.shape_cast %67 : vector<1x36xf32> to vector<1x36xf32>
    %74 = vector.broadcast %73 : vector<1x36xf32> to vector<72x36xf32>
    %75 = vector.broadcast %cst_31 : f32 to vector<72x36xf32>
    %76 = arith.select %72, %74, %75 : vector<72x36xi1>, vector<72x36xf32>
    %77 = arith.addf %70, %76 : vector<72x36xf32>
    %c0_32 = arith.constant 0 : index
    %c0_33 = arith.constant 0 : index
    %78 = vector.load %arg6[%c0_32, %c0_33] : memref<36x16xf32, #tpu.memory_space<vmem>>, vector<36x16xf32>
    %cst_34 = arith.constant dense<0.000000e+00> : vector<1x16xf32>
    %79 = tpu.matmul %61, %78, %cst_34 {dimension_numbers = #tpu.dot_dimension_numbers<[1], [0], [0], [1], [0, 0, 1, 1], [], []>} : vector<1x36xf32>, vector<36x16xf32>, vector<1x16xf32> -> vector<1x16xf32>
    %c0_35 = arith.constant 0 : index
    %c0_36 = arith.constant 0 : index
    %80 = vector.load %arg7[%c0_35, %c0_36] : memref<1x16xf32, #tpu.memory_space<vmem>>, vector<1x16xf32>
    %81 = arith.addf %79, %80 : vector<1x16xf32>
    %cst_37 = arith.constant dense<0.000000e+00> : vector<72x16xf32>
    %82 = tpu.matmul %77, %78, %cst_37 {dimension_numbers = #tpu.dot_dimension_numbers<[1], [0], [0], [1], [0, 0, 1, 1], [], []>} : vector<72x36xf32>, vector<36x16xf32>, vector<72x16xf32> -> vector<72x16xf32>
    %83 = math.absf %82 : vector<72x16xf32>
    %cst_38 = arith.constant dense<0.000000e+00> : vector<1x16xf32>
    %84 = tpu.matmul %28, %83, %cst_38 {dimension_numbers = #tpu.dot_dimension_numbers<[1], [0], [0], [1], [0, 0, 1, 1], [], []>} : vector<1x72xf32>, vector<72x16xf32>, vector<1x16xf32> -> vector<1x16xf32>
    %85 = arith.addf %81, %84 : vector<1x16xf32>
    %86 = arith.subf %81, %84 : vector<1x16xf32>
    %87 = arith.subf %85, %86 : vector<1x16xf32>
    %cst_39 = arith.constant 0.000000e+00 : f32
    %88 = vector.broadcast %cst_39 : f32 to vector<1x16xf32>
    %89 = arith.cmpf oeq, %87, %88 : vector<1x16xf32>
    %cst_40 = arith.constant 1.000000e+00 : f32
    %90 = vector.broadcast %cst_40 : f32 to vector<1x16xf32>
    %91 = arith.select %89, %90, %87 : vector<1x16xi1>, vector<1x16xf32>
    %92 = arith.divf %85, %91 : vector<1x16xf32>
    %cst_41 = arith.constant 1.000000e+00 : f32
    %93 = vector.broadcast %cst_41 : f32 to vector<1x16xf32>
    %94 = arith.subf %93, %92 : vector<1x16xf32>
    %95 = arith.mulf %94, %85 : vector<1x16xf32>
    %cst_42 = arith.constant 5.000000e-01 : f32
    %96 = vector.broadcast %cst_42 : f32 to vector<1x16xf32>
    %97 = arith.mulf %95, %96 : vector<1x16xf32>
    %cst_43 = arith.constant 0.000000e+00 : f32
    %98 = vector.broadcast %cst_43 : f32 to vector<1x16xf32>
    %99 = arith.cmpf ole, %85, %98 : vector<1x16xf32>
    %cst_44 = arith.constant 0.000000e+00 : f32
    %100 = vector.broadcast %cst_44 : f32 to vector<1x16xf32>
    %101 = arith.cmpf oge, %86, %100 : vector<1x16xf32>
    %cst_45 = arith.constant 0.000000e+00 : f32
    %102 = vector.broadcast %cst_45 : f32 to vector<1x16xf32>
    %103 = arith.cmpf ogt, %85, %102 : vector<1x16xf32>
    %cst_46 = arith.constant 0.000000e+00 : f32
    %104 = vector.broadcast %cst_46 : f32 to vector<1x16xf32>
    %105 = arith.cmpf olt, %86, %104 : vector<1x16xf32>
    %106 = arith.andi %103, %105 : vector<1x16xi1>
    %107 = arith.mulf %92, %81 : vector<1x16xf32>
    %108 = arith.addf %107, %97 : vector<1x16xf32>
    %109 = arith.select %101, %81, %108 : vector<1x16xi1>, vector<1x16xf32>
    %cst_47 = arith.constant 0.000000e+00 : f32
    %110 = vector.broadcast %cst_47 : f32 to vector<1x16xf32>
    %111 = arith.select %99, %110, %109 : vector<1x16xi1>, vector<1x16xf32>
    %cst_48 = arith.constant 1.000000e+00 : f32
    %112 = vector.broadcast %cst_48 : f32 to vector<1x16xf32>
    %113 = arith.select %101, %112, %92 : vector<1x16xi1>, vector<1x16xf32>
    %cst_49 = arith.constant 0.000000e+00 : f32
    %114 = vector.broadcast %cst_49 : f32 to vector<1x16xf32>
    %115 = arith.select %99, %114, %113 : vector<1x16xi1>, vector<1x16xf32>
    %cst_50 = arith.constant 0.000000e+00 : f32
    %116 = vector.broadcast %cst_50 : f32 to vector<1x16xf32>
    %117 = arith.select %106, %97, %116 : vector<1x16xi1>, vector<1x16xf32>
    %118 = tpu.iota {dimensions = array<i32: 0>} : vector<72x16xi32>
    %119 = vector.broadcast %115 : vector<1x16xf32> to vector<72x16xf32>
    %120 = arith.mulf %82, %119 : vector<72x16xf32>
    %c65_i32 = arith.constant 65 : i32
    %121 = vector.broadcast %c65_i32 : i32 to vector<72x16xi32>
    %122 = arith.cmpi eq, %118, %121 : vector<72x16xi32>
    %cst_51 = arith.constant 0.000000e+00 : f32
    %123 = vector.shape_cast %117 : vector<1x16xf32> to vector<1x16xf32>
    %124 = vector.broadcast %123 : vector<1x16xf32> to vector<72x16xf32>
    %125 = vector.broadcast %cst_51 : f32 to vector<72x16xf32>
    %126 = arith.select %122, %124, %125 : vector<72x16xi1>, vector<72x16xf32>
    %127 = arith.addf %120, %126 : vector<72x16xf32>
    %c0_52 = arith.constant 0 : index
    %c0_53 = arith.constant 0 : index
    %128 = vector.load %arg8[%c0_52, %c0_53] : memref<16x128xf32, #tpu.memory_space<vmem>>, vector<16x128xf32>
    %cst_54 = arith.constant dense<0.000000e+00> : vector<1x128xf32>
    %129 = tpu.matmul %111, %128, %cst_54 {dimension_numbers = #tpu.dot_dimension_numbers<[1], [0], [0], [1], [0, 0, 1, 1], [], []>} : vector<1x16xf32>, vector<16x128xf32>, vector<1x128xf32> -> vector<1x128xf32>
    %c0_55 = arith.constant 0 : index
    %c0_56 = arith.constant 0 : index
    %130 = vector.load %arg9[%c0_55, %c0_56] : memref<1x128xf32, #tpu.memory_space<vmem>>, vector<1x128xf32>
    %131 = arith.addf %129, %130 : vector<1x128xf32>
    %cst_57 = arith.constant dense<0.000000e+00> : vector<72x128xf32>
    %132 = tpu.matmul %127, %128, %cst_57 {dimension_numbers = #tpu.dot_dimension_numbers<[1], [0], [0], [1], [0, 0, 1, 1], [], []>} : vector<72x16xf32>, vector<16x128xf32>, vector<72x128xf32> -> vector<72x128xf32>
    %133 = math.absf %132 : vector<72x128xf32>
    %cst_58 = arith.constant dense<0.000000e+00> : vector<1x128xf32>
    %134 = tpu.matmul %28, %133, %cst_58 {dimension_numbers = #tpu.dot_dimension_numbers<[1], [0], [0], [1], [0, 0, 1, 1], [], []>} : vector<1x72xf32>, vector<72x128xf32>, vector<1x128xf32> -> vector<1x128xf32>
    %135 = arith.addf %131, %134 : vector<1x128xf32>
    %136 = arith.subf %131, %134 : vector<1x128xf32>
    %137 = tpu.iota {dimensions = array<i32: 0>} : vector<2x128xi32>
    %c0_i32 = arith.constant 0 : i32
    %138 = vector.broadcast %c0_i32 : i32 to vector<2x128xi32>
    %139 = arith.cmpi eq, %137, %138 : vector<2x128xi32>
    %140 = vector.shape_cast %135 : vector<1x128xf32> to vector<1x128xf32>
    %141 = vector.broadcast %140 : vector<1x128xf32> to vector<2x128xf32>
    %142 = vector.shape_cast %136 : vector<1x128xf32> to vector<1x128xf32>
    %143 = vector.broadcast %142 : vector<1x128xf32> to vector<2x128xf32>
    %144 = arith.select %139, %141, %143 : vector<2x128xi1>, vector<2x128xf32>
    %c0_59 = arith.constant 0 : index
    %c0_60 = arith.constant 0 : index
    %c0_61 = arith.constant 0 : index
    %145 = vector.load %arg10[%c0_59, %c0_60, %c0_61] : memref<1x2x128xf32, #tpu.memory_space<vmem>>, vector<1x2x128xf32>
    %146 = vector.shape_cast %145 : vector<1x2x128xf32> to vector<2x128xf32>
    %147 = vector.shape_cast %144 : vector<2x128xf32> to vector<1x2x128xf32>
    tpu.vector_store %arg10[%c0_59, %c0_60, %c0_61], %147 {strides = array<i32>} : memref<1x2x128xf32, #tpu.memory_space<vmem>>, vector<1x2x128xf32>,
    return
  }
  func.func @transform_0(%arg0: i32) -> (i32, i32, i32) {
    %c0_i32 = arith.constant 0 : i32
    %c0_i32_0 = arith.constant 0 : i32
    %c0_i32_1 = arith.constant 0 : i32
    return %arg0, %c0_i32, %c0_i32_0 : i32, i32, i32
  }
  func.func @transform_1(%arg0: i32) -> (i32, i32) {
    %c0_i32 = arith.constant 0 : i32
    %c0_i32_0 = arith.constant 0 : i32
    %c0_i32_1 = arith.constant 0 : i32
    return %c0_i32, %c0_i32_0 : i32, i32
  }
  func.func @transform_2(%arg0: i32) -> (i32, i32) {
    %c0_i32 = arith.constant 0 : i32
    %c0_i32_0 = arith.constant 0 : i32
    %c0_i32_1 = arith.constant 0 : i32
    return %c0_i32, %c0_i32_0 : i32, i32
  }
  func.func @transform_3(%arg0: i32) -> (i32, i32) {
    %c0_i32 = arith.constant 0 : i32
    %c0_i32_0 = arith.constant 0 : i32
    %c0_i32_1 = arith.constant 0 : i32
    return %c0_i32, %c0_i32_0 : i32, i32
  }
  func.func @transform_4(%arg0: i32) -> (i32, i32) {
    %c0_i32 = arith.constant 0 : i32
    %c0_i32_0 = arith.constant 0 : i32
    %c0_i32_1 = arith.constant 0 : i32
    return %c0_i32, %c0_i32_0 : i32, i32
  }
  func.func @transform_5(%arg0: i32) -> (i32, i32) {
    %c0_i32 = arith.constant 0 : i32
    %c0_i32_0 = arith.constant 0 : i32
    %c0_i32_1 = arith.constant 0 : i32
    return %c0_i32, %c0_i32_0 : i32, i32
  }
  func.func @transform_6(%arg0: i32) -> (i32, i32) {
    %c0_i32 = arith.constant 0 : i32
    %c0_i32_0 = arith.constant 0 : i32
    %c0_i32_1 = arith.constant 0 : i32
    return %c0_i32, %c0_i32_0 : i32, i32
  }
  func.func @transform_7(%arg0: i32) -> (i32, i32) {
    %c0_i32 = arith.constant 0 : i32
    %c0_i32_0 = arith.constant 0 : i32
    %c0_i32_1 = arith.constant 0 : i32
    return %c0_i32, %c0_i32_0 : i32, i32
  }
  func.func @transform_8(%arg0: i32) -> (i32, i32) {
    %c0_i32 = arith.constant 0 : i32
    %c0_i32_0 = arith.constant 0 : i32
    %c0_i32_1 = arith.constant 0 : i32
    return %c0_i32, %c0_i32_0 : i32, i32
  }
  func.func @transform_9(%arg0: i32) -> (i32, i32, i32) {
    %c0_i32 = arith.constant 0 : i32
    %c0_i32_0 = arith.constant 0 : i32
    %c0_i32_1 = arith.constant 0 : i32
    return %arg0, %c0_i32, %c0_i32_0 : i32, i32, i32
  }
}

</mosaic_0001>

<bundles_post_ra>
// kernel: _zonotope_batched.1
= control target key start
LH: loop header
LB: loop body
LE: loop exit
PB: predicated region body
PF: predicated region fallthrough
CT: control target
= control target key end

     0   :  { %s1679_s11 = smov 0   ;;  %s2014_s0 = inlined_call_operand.vmem [shape: f32[4,1,72], index: 0, kind: input, shape index: {}]   ;;  %s2015_s1 = inlined_call_operand.<no memory space> [shape: f32[1,1], index: 1, kind: input, shape index: {}]   ;;  %s2016_s2 = inlined_call_operand.vmem [shape: f32[72,36], index: 2, kind: input, shape index: {}]   ;;  %s2017_s3 = inlined_call_operand.vmem [shape: f32[72,36], index: 3, kind: input, shape index: {}]   ;;  %s2018_s4 = inlined_call_operand.vmem [shape: f32[1,36], index: 4, kind: input, shape index: {}]   ;;  %s2019_s5 = inlined_call_operand.vmem [shape: f32[36,16], index: 5, kind: input, shape index: {}]   ;;  %s2020_s6 = inlined_call_operand.vmem [shape: f32[1,16], index: 6, kind: input, shape index: {}]   ;;  %s2021_s7 = inlined_call_operand.vmem [shape: f32[16,128], index: 7, kind: input, shape index: {}]   ;;  %s2022_s8 = inlined_call_operand.vmem [shape: f32[1,128], index: 8, kind: input, shape index: {}]   ;;  %s2023_s9 = inlined_call_operand.vmem [shape: f32[4,2,128], index: 9, kind: output, shape index: {}]  }
   0x1   :  { %v14_v0 = vstv %s2015_s1 }
   0x2   :  { %15 = vst [vmem:[#allocation2] sm:$0x1] %v14_v0 }
   0x3 LB: > { %s1318_s12 = sadd.s32 4294967295, %s1621_s11   ;;  %p1322_p0 = scmp.ge.s32.totalorder %s1621_s11, 1  ;;  %s1621_s11 = sphi %s1679_s11, %s21_s11  }
   0x4   : > { %p287_p1 = scmp.lt.s32.totalorder %s1621_s11, 5 }
   0x6   : > { %p288_p2 = pnand %p1322_p0, %p287_p1 }
   0x7   : > { %p320_p3 = scmp.lt.s32.totalorder (!%p288_p2), %s1318_s12, 3 }
   0x8   : > { %291 = sbr.rel (%p288_p2) target bundleno = 1305 (0x519), region = 56 }
   0xd   : > { %v328_v1 = vld [vmem:[#allocation2] sm:$0x1]  ;;  %v1623_v3 = vmov 0   ;;  %v1624_v4 = vmov 0.0   ;;  %v1696_v5 = vld [vmem:[%s2016_s2 + $0x38] sm:$0xff]  ;;  %v1707_v7 = vld [vmem:[%s2016_s2 + $0x30] sm:$0xff]  ;;  %v334_v22 = vlaneseq }
   0xe   : > { %v1690_v2 = vld [vmem:[%s2016_s2 + $0x40] sm:$0xff]  ;;  %1610 = vset.pattern.permute.xlu0 %v1623_v3  ;;  %1427 = vmatprep.subr.mxu0 %v1624_v4  ;;  %v445_v8 = vld [vmem:[%s2017_s3 + $0x38] sm:$0xff]  ;;  %v1718_v9 = vld [vmem:[%s2016_s2 + $0x28] sm:$0xff]  ;;  %vm1625_vm0 = vmmov 0   ;;  %s2027_s12 = smov (!%p320_p3, %s1318_s12), 3  ;;  %vm364_vm2 = vcmask 588800  }
   0xf   : > { %v446_v6 = vld [vmem:[%s2017_s3 + $0x40] sm:$0xff]  ;;  %331 = vperm.xlu0 %1610, %v328_v1   ;;  %1428 = vmatpush3.msra.mxu0 %v1690_v2  ;;  %v444_v10 = vld [vmem:[%s2017_s3 + $0x30] sm:$0xff]  ;;  %v443_v12 = vld [vmem:[%s2017_s3 + $0x28] sm:$0xff]  ;;  %v1794_v23 = vshrl.u32 %v334_v22, 7  ;;  %s322_s30 = scalar_lea.vmem %s2014_s0, %s2027_s12  ;;  %v348_v32 = vand.u32 127, %v334_v22  ;;  %vm606_vm4 = vcmask 1043456  }
  0x10   : > { %1429 = vmatprep.subr.mxu0 %v1624_v4  ;;  %1448 = vmatprep.subr.mxu1 %v1624_v4  ;;  %v1729_v11 = vld [vmem:[%s2016_s2 + $0x20] sm:$0xff]  ;;  %v1740_v13 = vld [vmem:[%s2016_s2 + $0x18] sm:$0xff]  ;;  %v1751_v15 = vld [vmem:[%s2016_s2 + $0x10] sm:$0xff]  ;;  %vm602_vm10 = vcmask 293888   ;;  %s1323_s10 = sshll.u32 %s2027_s12, 1 }
  0x11   : > { %1430 = vmatpush3.msra.mxu0 %v1696_v5  ;;  %1449 = vmatpush3.msra.mxu1 %v446_v6  ;;  %v442_v14 = vld [vmem:[%s2017_s3 + $0x20] sm:$0xff]  ;;  %v441_v16 = vld [vmem:[%s2017_s3 + $0x18] sm:$0xff]  ;;  %v1762_v17 = vld [vmem:[%s2016_s2 + $0x8] sm:$0xff]  ;;  %v1801_v24 = vsub.s32 0, %v1794_v23  ;;  %vm351_vm1 = vcmp.lt.s32.totalorder %v348_v32, 66  ;;  %vm349_vm3 = vcmp.lt.s32.totalorder %v348_v32, 64  ;;  %s326_s1 = scalar_lea.vmem %s2023_s9, %s1323_s10 }
  0x12   : > { %1431 = vmatprep.subr.mxu0 %v1624_v4  ;;  %1450 = vmatprep.subr.mxu1 %v1624_v4  ;;  %v440_v18 = vld [vmem:[%s2017_s3 + $0x10] sm:$0xff]  ;;  %v1773_v19 = vld [vmem:[%s2016_s2] sm:$0xff]  ;;  %v439_v20 = vld [vmem:[%s2017_s3 + $0x8] sm:$0xff]  ;;  %v352_v38 = vsel %vm351_vm1, 1.0, %v1624_v4  ;;  %vm965_vm1 = vcmask 130048  }
  0x13   : > { %1432 = vmatpush3.msra.mxu0 %v1707_v7  ;;  %1451 = vmatpush3.msra.mxu1 %v445_v8  ;;  %v438_v21 = vld [vmem:[%s2017_s3] sm:$0xff]  ;;  %v599_v42 = vld [vmem:[%s2019_s5 + $0x18] sm:$0xff]  ;;  %v598_v43 = vld [vmem:[%s2019_s5 + $0x10] sm:$0xff] }
  0x14   : > { %1433 = vmatprep.subr.mxu0 %v1624_v4  ;;  %1452 = vmatprep.subr.mxu1 %v1624_v4  ;;  %v327_v26 = vld [vmem:[%s322_s30] sm:$0x1]  ;;  %v597_v44 = vld [vmem:[%s2019_s5 + $0x8] sm:$0xff] }
  0x15   : > { %1434 = vmatpush3.msra.mxu0 %v1718_v9  ;;  %1453 = vmatpush3.msra.mxu1 %v444_v10  ;;  %v600_v41 = vld [vmem:[%s2019_s5 + $0x20] sm:$0xf] }
  0x16   : > { %1435 = vmatprep.subr.mxu0 %v1624_v4  ;;  %1454 = vmatprep.subr.mxu1 %v1624_v4  ;;  %v596_v45 = vld [vmem:[%s2019_s5] sm:$0xff] }
  0x17   : > { %1436 = vmatpush3.msra.mxu0 %v1729_v11  ;;  %1455 = vmatpush3.msra.mxu1 %v443_v12  ;;  %v363_v46 = vld [vmem:[%s2018_s4] sm:$0x1] }
  0x18   : > { %1437 = vmatprep.subr.mxu0 %v1624_v4  ;;  %1456 = vmatprep.subr.mxu1 %v1624_v4 }
  0x19   : > { %1438 = vmatpush3.msra.mxu0 %v1740_v13  ;;  %1457 = vmatpush3.msra.mxu1 %v442_v14 }
  0x1a   : > { %1439 = vmatprep.subr.mxu0 %v1624_v4  ;;  %1458 = vmatprep.subr.mxu1 %v1624_v4 }
  0x1b   : > { %1440 = vmatpush3.msra.mxu0 %v1751_v15  ;;  %1459 = vmatpush3.msra.mxu1 %v441_v16 }
  0x1c   : > { %1441 = vmatprep.subr.mxu0 %v1624_v4  ;;  %1460 = vmatprep.subr.mxu1 %v1624_v4 }
  0x1d   : > { %1442 = vmatpush3.msra.mxu0 %v1762_v17  ;;  %1461 = vmatpush3.msra.mxu1 %v440_v18 }
  0x1e   : > { %1443 = vmatprep.subr.mxu0 %v1624_v4  ;;  %1445 = vmatprep.mubr.msk.f32.mxu0 %vm1625_vm0, %v1624_v4 }
  0x1f   : > { %1444 = vmatpush3.msra.mxu0 %v1773_v19  ;;  %1462 = vmatprep.subr.mxu1 %v1624_v4 }
  0x20   : > { %1463 = vmatpush3.msra.mxu1 %v439_v20  ;;  %1466 = vmatprep.mubr.msk.f32.mxu1 %vm1625_vm0, %v1624_v4 }
  0x21   : > { %1464 = vmatprep.subr.mxu1 %v1624_v4  ;;  %1519 = vmatprep.subr.mxu0 %v1624_v4 }
  0x22   : > { %1465 = vmatpush3.msra.mxu1 %v438_v21 }
  0x23   : > { %1469 = vmatprep.subr.mxu1 %v1624_v4 }
  0x8a   : > { %v332_v25 = vpop.permute.xlu0 %331 }
  0x8b   : > { %v337_v27 = vrot.slane %v332_v25, %v1801_v24 }
  0x8d   : > { %v338_v28 = vadd.f32 %v337_v27, %v327_v26  ;;  %v340_v29 = vsub.f32 %v327_v26, %v337_v27 }
  0x8f   : > { %v339_v30 = vmin.f32 %v338_v28, 1.0  ;;  %v341_v31 = vmax.f32 %v340_v29, 0.0 }
  0x91   : > { %v342_v33 = vadd.f32 %v341_v31, %v339_v30 }
  0x93   : > { %v343_v34 = vsub.f32 %v342_v33, %v341_v31  ;;  %v1324_v35 = vadd.f32 -0.1307, %v342_v33 }
  0x95   : > { %v346_v36 = vmul.f32 3.2456994, %v343_v34  ;;  %v345_v37 = vmul.f32 3.2456994, %v1324_v35 }
  0x97   : > { %v350_v39 = vand.u32 2147483647, %v346_v36  ;;  %1446 = vmatmul.mubr.msk.f32.vlgmr.msra.gmra.mxu0 %vm364_vm2, %v345_v37 }
  0x98   : > { %1537 = vmatprep.mubr.msk.f32.mxu0 %vm1625_vm0, %v1624_v4 }
  0x99   : > { %v1812_v40 = vsel %vm349_vm3, %v350_v39, %v352_v38 }
  0x9a   : > { %1467 = vmatmul.mubr.msk.f32.vlgmr.msra.gmra.mxu1 %vm364_vm2, %v1812_v40 }
  0x9b   : > { %1479 = vmatprep.mubr.msk.f32.mxu1 %vm1625_vm0, %v1624_v4  ;;  %1470 = vmatpush3.msk.msra.mxu1 %vm606_vm4, %v600_v41 }
  0x9c   : > { %1471 = vmatprep.subr.mxu1 %v1624_v4 }
  0x9d   : > { %1472 = vmatpush3.msra.mxu1 %v599_v42 }
  0x9e   : > { %1473 = vmatprep.subr.mxu1 %v1624_v4 }
  0x9f   : > { %1474 = vmatpush3.msra.mxu1 %v598_v43 }
  0xa0   : > { %1475 = vmatprep.subr.mxu1 %v1624_v4 }
  0xa1   : > { %1476 = vmatpush3.msra.mxu1 %v597_v44 }
  0xa2   : > { %1477 = vmatprep.subr.mxu1 %v1624_v4 }
  0xa3   : > { %1478 = vmatpush3.msra.mxu1 %v596_v45 }
  0xa4   : > { %1482 = vmatprep.subr.mxu1 %v1624_v4 }
 0x157   : > { %v434_v47 = vpop.f32.mrf.mxu0 }
 0x158   : > { %v435_v48 = vadd.f32 %v434_v47, %v363_v46 }
 0x159   : > { %v1447_v49 = vpop.f32.mrf.mxu0 }
 0x15a   : > { %v516_v50 = vpop.f32.mrf.mxu1 }
 0x15b   : > { %v520_v51 = vadd.f32 %v516_v50, %v435_v48  ;;  %v521_v52 = vsub.f32 %v435_v48, %v516_v50 }
 0x15c   : > { %v1468_v53 = vpop.f32.mrf.mxu1 }
 0x15d   : > { %v522_v54 = vsub.f32 %v520_v51, %v521_v52  ;;  %vm532_vm5 = vcmp.gt.f32.partialorder %v520_v51, 0.0  ;;  %vm533_vm6 = vcmp.lt.f32.partialorder %v521_v52, 0.0  ;;  %vm531_vm9 = vcmp.ge.f32.partialorder %v521_v52, 0.0  ;;  %v963_v52 = vld [vmem:[%s2021_s7 + $0x8] sm:$0xff]  ;;  %v962_v53 = vld [vmem:[%s2021_s7] sm:$0xff] }
 0x15e   : > { %vm1842_vm7 = vmand %vm532_vm5, %vm533_vm6  ;;  %vm530_vm11 = vcmp.le.f32.partialorder %v520_v51, 0.0 }
 0x15f   : > { %vm523_vm8 = vcmp.eq.f32.partialorder %v522_v54, 0.0 }
 0x160   : > { %v524_v56 = vsel %vm523_vm8, 1.0, %v522_v54  ;;  %v601_v54 = vld [vmem:[%s2020_s6] sm:$0x1] }
 0x161   : > { %1611 = vrcp.f32 %v524_v56 }
 0x16e   : > { %v1612_v57 = vpop.eup %1611 }
 0x16f   : > { %v526_v58 = vmul.f32 %v1612_v57, %v520_v51 }
 0x171   : > { %v527_v59 = vsub.f32 1.0, %v526_v58  ;;  %v535_v62 = vmul.f32 %v526_v58, %v435_v48  ;;  %v539_v0 = vsel %vm531_vm9, 1.0, %v526_v58 }
 0x172   : > { %v540_v6 = vsel %vm530_vm11, 0.0, %v539_v0 }
 0x173   : > { %v528_v60 = vmul.f32 %v527_v59, %v520_v51  ;;  %v555_v8 = vrot.slane %v540_v6, %v1801_v24 }
 0x175   : > { %v529_v61 = vmul.f32 0.5, %v528_v60  ;;  %v556_v10 = vmul.f32 %v555_v8, %v1773_v19  ;;  %v557_v12 = vmul.f32 %v555_v8, %v1762_v17  ;;  %v558_v14 = vmul.f32 %v555_v8, %v1751_v15 }
 0x176   : > { %v559_v16 = vmul.f32 %v555_v8, %v1740_v13  ;;  %v560_v17 = vmul.f32 %v555_v8, %v1729_v11  ;;  %v561_v15 = vmul.f32 %v555_v8, %v1718_v9  ;;  %v1881_v13 = vadd.s32 64, %v1794_v23 }
 0x177   : > { %v536_v63 = vadd.f32 %v535_v62, %v529_v61  ;;  %v541_v18 = vsel %vm1842_vm7, %v529_v61, 0.0  ;;  %v562_v11 = vmul.f32 %v555_v8, %v1707_v7  ;;  %v563_v9 = vmul.f32 %v555_v8, %v1696_v5 }
 0x178   : > { %v577_v19 = vrot.slane %v541_v18, %v1801_v24  ;;  %vm573_vm12 = vcmp.eq.s32.totalorder %v1881_v13, 64  ;;  %v564_v21 = vmul.f32 %v555_v8, %v1690_v2  ;;  %vm939_vm6 = vcmp.eq.s32.totalorder %v1881_v13, 65 }
 0x179   : > { %v537_v1 = vsel %vm531_vm9, %v435_v48, %v536_v63 }
 0x17a   : > { %v538_v3 = vsel %vm530_vm11, 0.0, %v537_v1  ;;  %v586_v20 = vsel %vm573_vm12, %v577_v19, 0.0 }
 0x17b   : > { %1480 = vmatmul.mubr.msk.f32.vlgmr.msra.gmra.mxu1 %vm602_vm10, %v538_v3  ;;  %v595_v7 = vadd.f32 %v586_v20, %v564_v21 }
 0x17c   : > { %1483 = vmatpush3.msk.msra.mxu1 %vm606_vm4, %v600_v41  ;;  %1492 = vmatprep.mubr.msk.f32.mxu1 %vm1625_vm0, %v1624_v4 }
 0x17d   : > { %1484 = vmatprep.subr.mxu1 %v1624_v4 }
 0x17e   : > { %1485 = vmatpush3.msra.mxu1 %v599_v42 }
 0x17f   : > { %1486 = vmatprep.subr.mxu1 %v1624_v4 }
 0x180   : > { %1487 = vmatpush3.msra.mxu1 %v598_v43 }
 0x181   : > { %1488 = vmatprep.subr.mxu1 %v1624_v4 }
 0x182   : > { %1489 = vmatpush3.msra.mxu1 %v597_v44 }
 0x183   : > { %1490 = vmatprep.subr.mxu1 %v1624_v4 }
 0x184   : > { %1491 = vmatpush3.msra.mxu1 %v596_v45 }
 0x185   : > { %1493 = vmatmul.mubr.msk.f32.vlgmr.msra.gmra.mxu1 %vm602_vm10, %v556_v10  ;;  %1578 = vmatprep.subr.mxu1 %v1624_v4 }
 0x186   : > { %1495 = vmatprep.mubr.msk.f32.mxu1 %vm1625_vm0, %v1624_v4 }
 0x189   : > { %1496 = vmatmul.mubr.msk.f32.gmra.mxu1 %vm602_vm10, %v557_v12 }
 0x18a   : > { %1498 = vmatprep.mubr.msk.f32.mxu1 %vm1625_vm0, %v1624_v4 }
 0x18d   : > { %1499 = vmatmul.mubr.msk.f32.gmra.mxu1 %vm602_vm10, %v558_v14 }
 0x18e   : > { %1501 = vmatprep.mubr.msk.f32.mxu1 %vm1625_vm0, %v1624_v4 }
 0x191   : > { %1502 = vmatmul.mubr.msk.f32.gmra.mxu1 %vm602_vm10, %v559_v16 }
 0x192   : > { %1504 = vmatprep.mubr.msk.f32.mxu1 %vm1625_vm0, %v1624_v4 }
 0x195   : > { %1505 = vmatmul.mubr.msk.f32.gmra.mxu1 %vm602_vm10, %v560_v17 }
 0x196   : > { %1507 = vmatprep.mubr.msk.f32.mxu1 %vm1625_vm0, %v1624_v4 }
 0x199   : > { %1508 = vmatmul.mubr.msk.f32.gmra.mxu1 %vm602_vm10, %v561_v15 }
 0x19a   : > { %1510 = vmatprep.mubr.msk.f32.mxu1 %vm1625_vm0, %v1624_v4 }
 0x19d   : > { %1511 = vmatmul.mubr.msk.f32.gmra.mxu1 %vm602_vm10, %v562_v11 }
 0x19e   : > { %1513 = vmatprep.mubr.msk.f32.mxu1 %vm1625_vm0, %v1624_v4 }
 0x1a1   : > { %1514 = vmatmul.mubr.msk.f32.gmra.mxu1 %vm602_vm10, %v563_v9 }
 0x1a2   : > { %1516 = vmatprep.mubr.msk.f32.mxu1 %vm1625_vm0, %v1624_v4 }
 0x1a5   : > { %1517 = vmatmul.mubr.msk.f32.gmra.mxu1 %vm602_vm10, %v595_v7 }
 0x1a6   : > { %1596 = vmatprep.mubr.msk.f32.mxu1 %vm1625_vm0, %v1624_v4 }
 0x23b   : > { %v676_v22 = vpop.f32.mrf.mxu1 }
 0x23c   : > { %v677_v55 = vadd.f32 %v676_v22, %v601_v54 }
 0x23d   : > { %v1481_v25 = vpop.f32.mrf.mxu1 }
 0x245   : > { %v1899_v26 = vpop.f32.mrf.mxu1 }
 0x246   : > { %v817_v51 = vand.u32 2147483647, %v1899_v26 }
 0x247   : > { %v1494_v27 = vpop.f32.mrf.mxu1 }
 0x249   : > { %v1901_v5 = vpop.f32.mrf.mxu1 }
 0x24a   : > { %v818_v50 = vand.u32 2147483647, %v1901_v5 }
 0x24b   : > { %v1497_v28 = vpop.f32.mrf.mxu1 }
 0x24d   : > { %v1903_v29 = vpop.f32.mrf.mxu1 }
 0x24e   : > { %v819_v49 = vand.u32 2147483647, %v1903_v29 }
 0x24f   : > { %v1500_v2 = vpop.f32.mrf.mxu1 }
 0x251   : > { %v1905_v30 = vpop.f32.mrf.mxu1 }
 0x252   : > { %v820_v48 = vand.u32 2147483647, %v1905_v30 }
 0x253   : > { %v1503_v31 = vpop.f32.mrf.mxu1 }
 0x255   : > { %v1907_v32 = vpop.f32.mrf.mxu1 }
 0x256   : > { %v821_v47 = vand.u32 2147483647, %v1907_v32 }
 0x257   : > { %v1506_v33 = vpop.f32.mrf.mxu1 }
 0x259   : > { %v1909_v34 = vpop.f32.mrf.mxu1 }
 0x25a   : > { %v822_v46 = vand.u32 2147483647, %v1909_v34 }
 0x25b   : > { %v1509_v35 = vpop.f32.mrf.mxu1 }
 0x25d   : > { %v1911_v36 = vpop.f32.mrf.mxu1 }
 0x25e   : > { %v823_v45 = vand.u32 2147483647, %v1911_v36 }
 0x25f   : > { %v1512_v37 = vpop.f32.mrf.mxu1 }
 0x261   : > { %v1913_v38 = vpop.f32.mrf.mxu1 }
 0x262   : > { %v824_v44 = vand.u32 2147483647, %v1913_v38 }
 0x263   : > { %v1515_v39 = vpop.f32.mrf.mxu1 }
 0x265   : > { %v1915_v41 = vpop.f32.mrf.mxu1 }
 0x266   : > { %v825_v42 = vand.u32 2147483647, %v1915_v41 }
 0x267   : > { %v1518_v43 = vpop.f32.mrf.mxu1 }
 0x268   : > { %1520 = vmatpush3.msra.mxu0 %v825_v42 }
 0x269   : > { %1521 = vmatprep.subr.mxu0 %v1624_v4 }
 0x26a   : > { %1522 = vmatpush3.msra.mxu0 %v824_v44 }
 0x26b   : > { %1523 = vmatprep.subr.mxu0 %v1624_v4 }
 0x26c   : > { %1524 = vmatpush3.msra.mxu0 %v823_v45 }
 0x26d   : > { %1525 = vmatprep.subr.mxu0 %v1624_v4 }
 0x26e   : > { %1526 = vmatpush3.msra.mxu0 %v822_v46 }
 0x26f   : > { %1527 = vmatprep.subr.mxu0 %v1624_v4 }
 0x270   : > { %1528 = vmatpush3.msra.mxu0 %v821_v47 }
 0x271   : > { %1529 = vmatprep.subr.mxu0 %v1624_v4 }
 0x272   : > { %1530 = vmatpush3.msra.mxu0 %v820_v48 }
 0x273   : > { %1531 = vmatprep.subr.mxu0 %v1624_v4 }
 0x274   : > { %1532 = vmatpush3.msra.mxu0 %v819_v49 }
 0x275   : > { %1533 = vmatprep.subr.mxu0 %v1624_v4 }
 0x276   : > { %1534 = vmatpush3.msra.mxu0 %v818_v50 }
 0x277   : > { %1535 = vmatprep.subr.mxu0 %v1624_v4 }
 0x278   : > { %1536 = vmatpush3.msra.mxu0 %v817_v51 }
 0x279   : > { %1538 = vmatmul.mubr.msk.f32.vlgmr.msra.gmra.mxu0 %vm364_vm2, %v1812_v40  ;;  %1540 = vmatprep.subr.mxu0 %v1624_v4 }
 0x27a   : > { %1544 = vmatprep.mubr.msk.f32.mxu0 %vm1625_vm0, %v1624_v4  ;;  %1541 = vmatpush3.msra.mxu0 %v963_v52 }
 0x27b   : > { %1542 = vmatprep.subr.mxu0 %v1624_v4 }
 0x27c   : > { %1543 = vmatpush3.msra.mxu0 %v962_v53 }
 0x27d   : > { %1547 = vmatprep.subr.mxu0 %v1624_v4 }
 0x339   : > { %v892_v56 = vpop.f32.mrf.mxu0 }
 0x33a   : > { %v896_v57 = vadd.f32 %v892_v56, %v677_v55  ;;  %v897_v58 = vsub.f32 %v677_v55, %v892_v56  ;;  %v964_v56 = vld [vmem:[%s2022_s8] sm:$0x1] }
 0x33b   : > { %v1539_v59 = vpop.f32.mrf.mxu0 }
 0x33c   : > { %v898_v60 = vsub.f32 %v896_v57, %v897_v58  ;;  %vm907_vm14 = vcmp.ge.f32.partialorder %v897_v58, 0.0  ;;  %vm906_vm15 = vcmp.le.f32.partialorder %v896_v57, 0.0  ;;  %vm908_vm3 = vcmp.gt.f32.partialorder %v896_v57, 0.0 }
 0x33d   : > { %vm909_vm4 = vcmp.lt.f32.partialorder %v897_v58, 0.0 }
 0x33e   : > { %vm899_vm13 = vcmp.eq.f32.partialorder %v898_v60, 0.0  ;;  %vm910_vm5 = vmand %vm908_vm3, %vm909_vm4 }
 0x33f   : > { %v900_v61 = vsel %vm899_vm13, 1.0, %v898_v60 }
 0x340   : > { %1613 = vrcp.f32 %v900_v61 }
 0x34d   : > { %v1614_v62 = vpop.eup %1613 }
 0x34e   : > { %v902_v63 = vmul.f32 %v1614_v62, %v896_v57 }
 0x350   : > { %v903_v0 = vsub.f32 1.0, %v902_v63  ;;  %v915_v3 = vsel %vm907_vm14, 1.0, %v902_v63  ;;  %v911_v8 = vmul.f32 %v902_v63, %v677_v55 }
 0x351   : > { %v916_v10 = vsel %vm906_vm15, 0.0, %v915_v3 }
 0x352   : > { %v904_v1 = vmul.f32 %v903_v0, %v896_v57  ;;  %v921_v16 = vrot.slane %v916_v10, %v1801_v24 }
 0x354   : > { %v905_v6 = vmul.f32 0.5, %v904_v1  ;;  %v922_v15 = vmul.f32 %v921_v16, %v1899_v26  ;;  %v923_v18 = vmul.f32 %v921_v16, %v1901_v5  ;;  %v924_v11 = vmul.f32 %v921_v16, %v1903_v29 }
 0x355   : > { %v925_v19 = vmul.f32 %v921_v16, %v1905_v30  ;;  %v926_v9 = vmul.f32 %v921_v16, %v1907_v32  ;;  %v927_v20 = vmul.f32 %v921_v16, %v1909_v34  ;;  %v928_v7 = vmul.f32 %v921_v16, %v1911_v36 }
 0x356   : > { %v912_v12 = vadd.f32 %v911_v8, %v905_v6  ;;  %v917_v21 = vsel %vm910_vm5, %v905_v6, 0.0  ;;  %v929_v25 = vmul.f32 %v921_v16, %v1913_v38  ;;  %v930_v27 = vmul.f32 %v921_v16, %v1915_v41 }
 0x357   : > { %v943_v22 = vrot.slane %v917_v21, %v1801_v24 }
 0x358   : > { %v913_v14 = vsel %vm907_vm14, %v677_v55, %v912_v12 }
 0x359   : > { %v914_v17 = vsel %vm906_vm15, 0.0, %v913_v14  ;;  %v952_v26 = vsel %vm939_vm6, %v943_v22, 0.0 }
 0x35a   : > { %1545 = vmatmul.mubr.msk.f32.vlgmr.msra.gmra.mxu0 %vm965_vm1, %v914_v17  ;;  %v961_v5 = vadd.f32 %v952_v26, %v930_v27 }
 0x35b   : > { %1548 = vmatpush3.msra.mxu0 %v963_v52  ;;  %1551 = vmatprep.mubr.msk.f32.mxu0 %vm1625_vm0, %v1624_v4 }
 0x35c   : > { %1549 = vmatprep.subr.mxu0 %v1624_v4 }
 0x35d   : > { %1550 = vmatpush3.msra.mxu0 %v962_v53 }
 0x35e   : > { %1552 = vmatmul.mubr.msk.f32.vlgmr.msra.gmra.mxu0 %vm965_vm1, %v922_v15 }
 0x35f   : > { %1554 = vmatprep.mubr.msk.f32.mxu0 %vm1625_vm0, %v1624_v4 }
 0x362   : > { %1555 = vmatmul.mubr.msk.f32.gmra.mxu0 %vm965_vm1, %v923_v18 }
 0x363   : > { %1557 = vmatprep.mubr.msk.f32.mxu0 %vm1625_vm0, %v1624_v4 }
 0x366   : > { %1558 = vmatmul.mubr.msk.f32.gmra.mxu0 %vm965_vm1, %v924_v11 }
 0x367   : > { %1560 = vmatprep.mubr.msk.f32.mxu0 %vm1625_vm0, %v1624_v4 }
 0x36a   : > { %1561 = vmatmul.mubr.msk.f32.gmra.mxu0 %vm965_vm1, %v925_v19 }
 0x36b   : > { %1563 = vmatprep.mubr.msk.f32.mxu0 %vm1625_vm0, %v1624_v4 }
 0x36e   : > { %1564 = vmatmul.mubr.msk.f32.gmra.mxu0 %vm965_vm1, %v926_v9 }
 0x36f   : > { %1566 = vmatprep.mubr.msk.f32.mxu0 %vm1625_vm0, %v1624_v4 }
 0x372   : > { %1567 = vmatmul.mubr.msk.f32.gmra.mxu0 %vm965_vm1, %v927_v20 }
 0x373   : > { %1569 = vmatprep.mubr.msk.f32.mxu0 %vm1625_vm0, %v1624_v4 }
 0x376   : > { %1570 = vmatmul.mubr.msk.f32.gmra.mxu0 %vm965_vm1, %v928_v7 }
 0x377   : > { %1572 = vmatprep.mubr.msk.f32.mxu0 %vm1625_vm0, %v1624_v4 }
 0x37a   : > { %1573 = vmatmul.mubr.msk.f32.gmra.mxu0 %vm965_vm1, %v929_v25 }
 0x37b   : > { %1575 = vmatprep.mubr.msk.f32.mxu0 %vm1625_vm0, %v1624_v4  ;;  %vm1257_vm0 = vcmp.eq.s32.totalorder %v1794_v23, 0 }
 0x37e   : > { %1576 = vmatmul.mubr.msk.f32.gmra.mxu0 %vm965_vm1, %v961_v5 }
 0x41a   : > { %v1035_v28 = vpop.f32.mrf.mxu0 }
 0x41b   : > { %v1036_v57 = vadd.f32 %v1035_v28, %v964_v56 }
 0x41c   : > { %v1546_v29 = vpop.f32.mrf.mxu0 }
 0x41e   : > { %v1132_v2 = vpop.f32.mrf.mxu0 }
 0x41f   : > { %v1176_v55 = vand.u32 2147483647, %v1132_v2 }
 0x420   : > { %v1553_v13 = vpop.f32.mrf.mxu0 }
 0x422   : > { %v1137_v30 = vpop.f32.mrf.mxu0 }
 0x423   : > { %v1177_v54 = vand.u32 2147483647, %v1137_v30 }
 0x424   : > { %v1556_v31 = vpop.f32.mrf.mxu0 }
 0x426   : > { %v1142_v32 = vpop.f32.mrf.mxu0 }
 0x427   : > { %v1178_v53 = vand.u32 2147483647, %v1142_v32 }
 0x428   : > { %v1559_v33 = vpop.f32.mrf.mxu0 }
 0x42a   : > { %v1147_v34 = vpop.f32.mrf.mxu0 }
 0x42b   : > { %v1179_v52 = vand.u32 2147483647, %v1147_v34 }
 0x42c   : > { %v1562_v35 = vpop.f32.mrf.mxu0 }
 0x42e   : > { %v1152_v36 = vpop.f32.mrf.mxu0 }
 0x42f   : > { %v1180_v51 = vand.u32 2147483647, %v1152_v36 }
 0x430   : > { %v1565_v37 = vpop.f32.mrf.mxu0 }
 0x432   : > { %v1157_v38 = vpop.f32.mrf.mxu0 }
 0x433   : > { %v1181_v50 = vand.u32 2147483647, %v1157_v38 }
 0x434   : > { %v1568_v39 = vpop.f32.mrf.mxu0 }
 0x436   : > { %v1162_v41 = vpop.f32.mrf.mxu0 }
 0x437   : > { %v1182_v49 = vand.u32 2147483647, %v1162_v41 }
 0x438   : > { %v1571_v42 = vpop.f32.mrf.mxu0 }
 0x43a   : > { %v1167_v43 = vpop.f32.mrf.mxu0 }
 0x43b   : > { %v1183_v48 = vand.u32 2147483647, %v1167_v43 }
 0x43c   : > { %v1574_v44 = vpop.f32.mrf.mxu0 }
 0x43e   : > { %v1172_v45 = vpop.f32.mrf.mxu0 }
 0x43f   : > { %v1184_v46 = vand.u32 2147483647, %v1172_v45 }
 0x440   : > { %v1577_v47 = vpop.f32.mrf.mxu0 }
 0x441   : > { %1579 = vmatpush3.msra.mxu1 %v1184_v46 }
 0x442   : > { %1580 = vmatprep.subr.mxu1 %v1624_v4 }
 0x443   : > { %1581 = vmatpush3.msra.mxu1 %v1183_v48 }
 0x444   : > { %1582 = vmatprep.subr.mxu1 %v1624_v4 }
 0x445   : > { %1583 = vmatpush3.msra.mxu1 %v1182_v49 }
 0x446   : > { %1584 = vmatprep.subr.mxu1 %v1624_v4 }
 0x447   : > { %1585 = vmatpush3.msra.mxu1 %v1181_v50 }
 0x448   : > { %1586 = vmatprep.subr.mxu1 %v1624_v4 }
 0x449   : > { %1587 = vmatpush3.msra.mxu1 %v1180_v51 }
 0x44a   : > { %1588 = vmatprep.subr.mxu1 %v1624_v4 }
 0x44b   : > { %1589 = vmatpush3.msra.mxu1 %v1179_v52 }
 0x44c   : > { %1590 = vmatprep.subr.mxu1 %v1624_v4 }
 0x44d   : > { %1591 = vmatpush3.msra.mxu1 %v1178_v53 }
 0x44e   : > { %1592 = vmatprep.subr.mxu1 %v1624_v4 }
 0x44f   : > { %1593 = vmatpush3.msra.mxu1 %v1177_v54 }
 0x450   : > { %1594 = vmatprep.subr.mxu1 %v1624_v4 }
 0x451   : > { %1595 = vmatpush3.msra.mxu1 %v1176_v55 }
 0x452   : > { %1597 = vmatmul.mubr.msk.f32.vlgmr.msra.gmra.mxu1 %vm364_vm2, %v1812_v40 }
 0x512   : > { %v1251_v58 = vpop.f32.mrf.mxu1 }
 0x513   : > { %v1255_v59 = vadd.f32 %v1251_v58, %v1036_v57  ;;  %v1256_v60 = vsub.f32 %v1036_v57, %v1251_v58 }
 0x514   : > { %v1598_v61 = vpop.f32.mrf.mxu1 }
 0x515   : > { %v1261_v4 = vrot.slane %v1255_v59, %v1801_v24  ;;  %v1265_v40 = vrot.slane %v1256_v60, %v1801_v24 }
 0x517   : > { %v1266_v62 = vsel %vm1257_vm0, %v1261_v4, %v1265_v40 }
 0x518   : > { %1267 = vst [vmem:[%s326_s1] sm:$0x3] %v1266_v62 }
 0x519 PF: > { %s21_s11 = sadd.s32 1, %s1621_s11  }
 0x51a   : > { %p18_p4 = scmp.ge.s32.totalorder %s21_s11, 6  }
 0x51c   :  { %20 = sbr.rel (!%p18_p4) target bundleno = 3 (0x3), region = 86 }

</bundles_post_ra>
